<compile_context>
chip_gen: v6e
topology: v6e:2x2x1
jax: 0.10.0
libtpu: 0.0.40
codegen_flags: <defaults>
</compile_context>

<pallas_src>
import jax
import jax.numpy as jnp
from jax.experimental import pallas as pl
from jax.experimental.pallas import tpu as pltpu


def _focus_conv_bn_silu_kernel(x_ref, w_ref, bias_ref, o_ref):
    # x_ref:    [K,  TM]  bf16   (channels on sublanes, flattened spatial on lanes)
    # w_ref:    [C2, K ]  bf16   (BN scale pre-folded into the weights)
    # bias_ref: [C2, 1 ]  f32    (folded BN shift)
    # o_ref:    [C2, TM]  out_dtype (bf16 by default)
    y = jnp.dot(w_ref[...], x_ref[...], preferred_element_type=jnp.float32)
    y = y + bias_ref[...]
    # SiLU: y * sigmoid(y)  (sigmoid goes to the EUP slot — free under HBM bound)
    o_ref[...] = (y * jax.nn.sigmoid(y)).astype(o_ref.dtype)


def _pick_tile_m(msp, batch, target=4096):
    """Lane-axis tile for the flattened spatial dim (Ho*Wo).

    Returns TM: either the full extent (tiny problems, < 128) or a multiple of
    128 capped at `target`. Partial boundary blocks are handled by Pallas, so
    no host-side padding/slicing is needed. When B == 1 the tile is shrunk so
    there are >= 2 grid steps (v7x megacore sharding; harmless elsewhere).
    """
    if msp < 128:
        return msp                      # single full-extent block (toy shapes)
    tm = min(target, (msp // 128) * 128)
    if batch == 1 and tm >= msp and msp >= 256:
        tm = max(128, ((msp + 1) // 2 // 128) * 128)
    return tm


def focus_forward(x_nchw, w, gamma, beta, run_mean, run_var, eps=1e-3,
                  out_dtype=jnp.bfloat16):
    """Focus(c1, c2, k=1) forward.  x_nchw: [B, C1, H, W]."""
    B, C1, H, W = x_nchw.shape
    C2 = w.shape[0]
    assert w.shape[1] == 4 * C1 and w.shape[2] == 1 and w.shape[3] == 1, \
        "kernel implements k=1 (the Focus default)"
    # TODO(synk): general k>1 convolution inside the Pallas kernel (k=1 is the module default).

    Ho, Wo = H // 2, W // 2
    K = 4 * C1
    Msp = Ho * Wo

    # --- Focus space-to-depth slicing: single fused XLA pass, stays NCHW ---
    # bf16 cast here so slice+concat+cast fuse into one pass over x. No K pad.
    x_flat = jnp.concatenate(
        [x_nchw[..., ::2, ::2], x_nchw[..., 1::2, ::2],
         x_nchw[..., ::2, 1::2], x_nchw[..., 1::2, 1::2]],
        axis=1,
    ).astype(jnp.bfloat16).reshape(B, K, Msp)

    # --- Fold BatchNorm (inference / running stats) into weight & bias ---
    inv_std = jax.lax.rsqrt(run_var.astype(jnp.float32) + eps)
    scale = gamma.astype(jnp.float32) * inv_std                          # [C2]
    bias = beta.astype(jnp.float32) - run_mean.astype(jnp.float32) * scale
    w_bf16 = (w.reshape(C2, K).astype(jnp.float32) * scale[:, None]
              ).astype(jnp.bfloat16)                                     # [C2, K]
    bias_col = bias.reshape(C2, 1)                                       # [C2, 1] f32

    # --- Tile the flattened spatial dim (lane axis); partial blocks allowed ---
    TM = _pick_tile_m(Msp, B)
    n_m = pl.cdiv(Msp, TM)

    out_bytes = jnp.dtype(out_dtype).itemsize
    cost = pl.CostEstimate(
        flops=2 * B * Msp * K * C2,
        transcendentals=B * Msp * C2,
        bytes_accessed=(B * K * Msp * 2          # x_flat (bf16)
                        + C2 * K * 2 + C2 * 4    # folded weight + bias
                        + B * C2 * Msp * out_bytes),
    )

    out_flat = pl.pallas_call(
        _focus_conv_bn_silu_kernel,
        out_shape=jax.ShapeDtypeStruct((B, C2, Msp), out_dtype),
        grid_spec=pltpu.PrefetchScalarGridSpec(
            num_scalar_prefetch=0,
            grid=(B, n_m),
            in_specs=[
                # x: one (K, TM) tile per grid step; batch dim squeezed out.
                pl.BlockSpec((None, K, TM), lambda b, m: (b, 0, m)),
                # Folded weight + bias: full-extent blocks, resident in VMEM.
                pl.BlockSpec((C2, K), lambda b, m: (0, 0)),
                pl.BlockSpec((C2, 1), lambda b, m: (0, 0)),
            ],
            out_specs=pl.BlockSpec((None, C2, TM), lambda b, m: (b, 0, m)),
        ),
        compiler_params=pltpu.CompilerParams(
            dimension_semantics=("parallel", "parallel"),
        ),
        cost_estimate=cost,
    )(x_flat, w_bf16, bias_col)

    # [B, C2, Msp] -> [B, C2, Ho, Wo]   (pure reshape, no transpose, no slice)
    return out_flat.reshape(B, C2, Ho, Wo)


def reference_forward(x_nchw, w, gamma, beta, run_mean, run_var, eps=1e-3):
    """Pure-JAX f32 reference matching PyTorch Focus (eval-mode BN)."""
    x_focus = jnp.concatenate(
        [x_nchw[..., ::2, ::2], x_nchw[..., 1::2, ::2],
         x_nchw[..., ::2, 1::2], x_nchw[..., 1::2, 1::2]],
        axis=1,
    )
    y = jnp.einsum('nchw,oc->nohw', x_focus, w[:, :, 0, 0])
    inv_std = 1.0 / jnp.sqrt(run_var + eps)
    y = y * (gamma * inv_std)[None, :, None, None] + \
        (beta - run_mean * gamma * inv_std)[None, :, None, None]
    return y * jax.nn.sigmoid(y)


if __name__ == "__main__":
    key = jax.random.PRNGKey(0)
    k_x, k_w, k_g, k_b, k_m, k_v = jax.random.split(key, 6)

    B, C1, H, W = 2, 4, 16, 16
    C2 = 32

    x = jax.random.normal(k_x, (B, C1, H, W), dtype=jnp.float32)

    # Deterministic synthetic parameters (shapes from Focus.__init__ with k=1).
    w = jax.random.normal(k_w, (C2, 4 * C1, 1, 1), dtype=jnp.float32) * 0.1
    gamma = 1.0 + 0.05 * jax.random.normal(k_g, (C2,), dtype=jnp.float32)
    beta = 0.02 * jax.random.normal(k_b, (C2,), dtype=jnp.float32)
    run_mean = 0.1 * jax.random.normal(k_m, (C2,), dtype=jnp.float32)
    run_var = jnp.abs(1.0 + 0.1 * jax.random.normal(k_v, (C2,), dtype=jnp.float32))

    out = focus_forward(x, w, gamma, beta, run_mean, run_var)
    out = jax.block_until_ready(out)

    ref = reference_forward(x, w, gamma, beta, run_mean, run_var)
    assert out.shape == (B, C2, H // 2, W // 2), out.shape
    # bf16 matmul inputs + bf16 output (f32 accumulation) -> loosened tolerance.
    assert jnp.allclose(out.astype(jnp.float32), ref, atol=5e-2, rtol=5e-2), \
        float(jnp.max(jnp.abs(out.astype(jnp.float32) - ref)))

    print("KERNEL_OK")
</pallas_src>

<mosaic_0001>
module attributes {stable_mosaic.version = 11 : i64} {
  func.func @_focus_conv_bn_silu_kernel(%arg0: i32, %arg1: i32, %arg2: memref<1x16x64xbf16, #tpu.memory_space<vmem>>, %arg3: memref<32x16xbf16, #tpu.memory_space<vmem>>, %arg4: memref<32x1xf32, #tpu.memory_space<vmem>>, %arg5: memref<1x32x64xbf16, #tpu.memory_space<vmem>>) attributes {dimension_semantics = [#tpu.dimension_semantics<parallel>, #tpu.dimension_semantics<parallel>], iteration_bounds = array<i64: 2, 1>, scalar_prefetch = 0 : i64, scratch_operands = 0 : i64, tpu.core_type = #tpu.core_type<tc>, window_params = [{transform_indices = @transform_0, window_bounds = array<i64: 1, 16, 64>}, {pipeline_mode = #tpu.pipeline_mode<synchronous>, transform_indices = @transform_1, window_bounds = array<i64: 32, 16>}, {pipeline_mode = #tpu.pipeline_mode<synchronous>, transform_indices = @transform_2, window_bounds = array<i64: 32, 1>}, {transform_indices = @transform_3, window_bounds = array<i64: 1, 32, 64>}]} {
    %c0 = arith.constant 0 : index
    %c0_0 = arith.constant 0 : index
    %0 = vector.load %arg3[%c0, %c0_0] : memref<32x16xbf16, #tpu.memory_space<vmem>>, vector<32x16xbf16>
    %c0_1 = arith.constant 0 : index
    %c0_2 = arith.constant 0 : index
    %c0_3 = arith.constant 0 : index
    %1 = vector.load %arg2[%c0_1, %c0_2, %c0_3] : memref<1x16x64xbf16, #tpu.memory_space<vmem>>, vector<1x16x64xbf16>
    %2 = vector.shape_cast %1 : vector<1x16x64xbf16> to vector<16x64xbf16>
    %cst = arith.constant dense<0.000000e+00> : vector<32x64xf32>
    %3 = tpu.matmul %0, %2, %cst {dimension_numbers = #tpu.dot_dimension_numbers<[1], [0], [0], [1], [0, 0, 1, 1], [], []>} : vector<32x16xbf16>, vector<16x64xbf16>, vector<32x64xf32> -> vector<32x64xf32>
    %c0_4 = arith.constant 0 : index
    %c0_5 = arith.constant 0 : index
    %4 = vector.load %arg4[%c0_4, %c0_5] : memref<32x1xf32, #tpu.memory_space<vmem>>, vector<32x1xf32>
    %5 = vector.broadcast %4 : vector<32x1xf32> to vector<32x64xf32>
    %6 = arith.addf %3, %5 : vector<32x64xf32>
    %7 = arith.negf %6 : vector<32x64xf32>
    %8 = math.exp %7 : vector<32x64xf32>
    %cst_6 = arith.constant 1.000000e+00 : f32
    %9 = vector.broadcast %cst_6 : f32 to vector<32x64xf32>
    %10 = arith.addf %9, %8 : vector<32x64xf32>
    %11 = arith.divf %9, %10 : vector<32x64xf32>
    %12 = arith.mulf %6, %11 : vector<32x64xf32>
    %13 = arith.truncf %12 : vector<32x64xf32> to vector<32x64xbf16>
    %c0_7 = arith.constant 0 : index
    %c0_8 = arith.constant 0 : index
    %c0_9 = arith.constant 0 : index
    %14 = vector.load %arg5[%c0_7, %c0_8, %c0_9] : memref<1x32x64xbf16, #tpu.memory_space<vmem>>, vector<1x32x64xbf16>
    %15 = vector.shape_cast %14 : vector<1x32x64xbf16> to vector<32x64xbf16>
    %16 = vector.shape_cast %13 : vector<32x64xbf16> to vector<1x32x64xbf16>
    tpu.vector_store %arg5[%c0_7, %c0_8, %c0_9], %16 {strides = array<i32>} : memref<1x32x64xbf16, #tpu.memory_space<vmem>>, vector<1x32x64xbf16>,
    return
  }
  func.func @transform_0(%arg0: i32, %arg1: i32) -> (i32, i32, i32) {
    %c0_i32 = arith.constant 0 : i32
    %c0_i32_0 = arith.constant 0 : i32
    return %arg0, %c0_i32, %arg1 : i32, i32, i32
  }
  func.func @transform_1(%arg0: i32, %arg1: i32) -> (i32, i32) {
    %c0_i32 = arith.constant 0 : i32
    %c0_i32_0 = arith.constant 0 : i32
    %c0_i32_1 = arith.constant 0 : i32
    return %c0_i32, %c0_i32_0 : i32, i32
  }
  func.func @transform_2(%arg0: i32, %arg1: i32) -> (i32, i32) {
    %c0_i32 = arith.constant 0 : i32
    %c0_i32_0 = arith.constant 0 : i32
    %c0_i32_1 = arith.constant 0 : i32
    return %c0_i32, %c0_i32_0 : i32, i32
  }
  func.func @transform_3(%arg0: i32, %arg1: i32) -> (i32, i32, i32) {
    %c0_i32 = arith.constant 0 : i32
    %c0_i32_0 = arith.constant 0 : i32
    return %arg0, %c0_i32, %arg1 : i32, i32, i32
  }
}

</mosaic_0001>

<bundles_post_ra>
// kernel: tpu_custom_call.1
= control target key start
LH: loop header
LB: loop body
LE: loop exit
PB: predicated region body
PF: predicated region fallthrough
CT: control target
= control target key end

     0   :  { %8 = vsyncpa [#allocation3], 0  ;;  %s799_s0 = inlined_call_operand.vmem [shape: bf16[2,16,64], index: 0, kind: input, shape index: {}]   ;;  %s800_s1 = inlined_call_operand.vmem [shape: bf16[32,16], index: 1, kind: input, shape index: {}]   ;;  %s801_s2 = inlined_call_operand.vmem [shape: f32[32,1], index: 2, kind: input, shape index: {}]   ;;  %s802_s3 = inlined_call_operand.hbm [shape: bf16[2,32,64], index: 3, kind: output, shape index: {}]  }
   0x1   :  { %10 = vsyncpa [#allocation3 + $0x1], 0  ;;  %s661_s12 = smov 0   ;;  %s663_s13 = smov 0  }
   0x2   :  { %s665_s14 = smov 0   ;;  %s667_s15 = smov 0  }
   0x3   :  { %s669_s16 = smov 0   ;;  %s671_s17 = smov 0  }
   0x4 LB: > { %s439_s18 = sadd.s32 4294967295, %s635_s17   ;;  %s440_s19 = sadd.s32 4294967294, %s635_s17   ;;  %s635_s17 = sphi %s671_s17, %s16_s17   ;;  %s631_s16 = sphi %s669_s16, %s809_s16   ;;  %s627_s15 = sphi %s667_s15, %s808_s15   ;;  %s623_s14 = sphi %s665_s14, %s807_s14   ;;  %s619_s13 = sphi %s663_s13, %s806_s13   ;;  %s615_s12 = sphi %s661_s12, %s805_s12  }
   0x5   : > { %s28_s20 = sadd.s32 1, %s631_s16  ;;  %s107_s21 = sadd.s32 1, %s623_s14 }
   0x6   : > { %p30_p0 = scmp.ge.s32.totalorder %s28_s20, 2  ;;  %p117_p1 = scmp.ne.s32.totalorder %s623_s14, %s619_s13 }
   0x7   : > { %p118_p2 = scmp.eq.s32.totalorder %s439_s18, 1  ;;  %p123_p3 = scmp.ne.s32.totalorder %s619_s13, %s615_s12 }
   0x8   : > { %s811_s20 = smov (%p30_p0, %s28_s20), 0  ;;  %p124_p5 = scmp.eq.s32.totalorder %s440_s19, 1 }
   0x9   : > { %p701_p4 = por %p118_p2, %p117_p1  ;;  %s102_s23 = ssub.s32 %s631_s16, %s811_s20 }
   0xa   : > { %p443_p6 = scmp.ge.s32.totalorder %s635_s17, 1  ;;  %p105_p7 = scmp.eq.s32.totalorder %s102_s23, 0 }
   0xb   : > { %p708_p8 = por %p124_p5, %p123_p3  ;;  %p159_p9 = scmp.lt.s32.totalorder %s635_s17, 3 }
   0xc   : > { %s714_s25 = scalar_select %p105_p7, %s623_s14, %s107_s21  }
   0xd   : > { %p160_p10 = pnand %p443_p6, %p159_p9 }
   0xe   : > { %p186_p11 = scmp.lt.s32.totalorder (!%p160_p10), %s627_s15, 1  ;;  %s183_s26 = sand.u32 (!%p160_p10), 1, %s619_s13  }
   0xf   : > { %163 = sbr.rel (%p160_p10) target bundleno = 280 (0x118), region = 32  ;;  %s444_s27 = sshll.u32 (!%p160_p10), %s183_s26, 4 }
  0x10   : > { %s470_s29 = sshll.u32 (!%p160_p10), %s627_s15, 8  ;;  %s638_s8 = smov (!%p160_p10), [#allocation2]  }
  0x14   : > { %v541_v0 = vld [vmem:[%s800_s1] sm:$0xff]   ;;  %vm241_vm0 = vcmask 130048   ;;  %s187_s28 = scalar_select %p186_p11, %s627_s15, 1  ;;  %v203_v1 = vld [vmem:[%s801_s2 + $0x10] sm:$0xff]  ;;  %v637_v3 = vmov 0   ;;  %v204_v4 = vld [vmem:[%s801_s2 + $0x18] sm:$0xff] }
  0x15   : > { %476 = vmatprep.mubr.msk.bf16.mxu0 %vm241_vm0, %v541_v0  ;;  %v201_v2 = vld [vmem:[%s801_s2] sm:$0xff]  ;;  %539 = vset.pattern.permute.xlu1 %v637_v3  ;;  %v202_v5 = vld [vmem:[%s801_s2 + $0x8] sm:$0xff]  ;;  %vm341_vm1 = vcmask 519168   ;;  %s754_s15 = scalar_lea.sflag [#allocation3], %s183_s26 }
  0x16   : > { %538 = vset.pattern.permute.xlu0 %v637_v3  ;;  %s465_s6 = sshll.u32 %s187_s28, 3  ;;  %217 = vperm.xlu1 %539, %v203_v1   ;;  %v542_v7 = vld [vmem:[%s800_s1 + $0x8] sm:$0xff]   ;;  %s185_s28 = scalar_lea.vmem [#allocation2], %s444_s27 }
  0x17   : > { %207 = vperm.xlu0 %538, %v201_v2   ;;  %s193_s9 = scalar_lea.vmem %s799_s0, %s465_s6  ;;  %s361_s30 = sshll.u32 %s185_s28, 4  ;;  %s750_s30 = int_to_ptr.vmem [resolvable:$true] %s361_s30 }
  0x18   : > { %v540_v6 = vld [vmem:[%s193_s9] sm:$0xff]   ;;  %s748_s6 = scalar_lea.hbm %s802_s3, %s470_s29  ;;  %s559_s7 = scalar_lea.vmem %s750_s30, 256 }
  0x19   : > { %474 = vmatprep.subr.bf16.mxu0 %v540_v6  ;;  %p560_p12 = scmp.ne.s32.totalorder %s750_s30, %s559_s7  ;;  %s563_s9 = sshll.u32 %s638_s8, 4  ;;  %s564_s9 = int_to_ptr.vmem [resolvable:$false] %s563_s9 }
  0x1a   : > { %222 = vperm.xlu1 %539, %v204_v4   ;;  %475 = vmatpush3.bf16.msra.mxu0 %v540_v6  ;;  %s565_s10 = scalar_lea.vmem %s564_s9, 512  ;;  %p566_p1 = scmp.lt.s32.totalorder %s750_s30, %s564_s9 }
  0x1b   : > { %212 = vperm.xlu0 %538, %v202_v5   ;;  %p561_p13 = pnand %p560_p12, %p701_p4  ;;  %p567_p2 = scmp.lt.s32.totalorder %s565_s10, %s559_s7 }
  0x1d   : > { %477 = vmatmul.mubr.msk.bf16.vlgmr.msra.gmra.mxu0 %vm241_vm0, %v542_v7  ;;  %p562_p0 = pneg %p561_p13  ;;  %p568_p3 = por %p567_p2, %p566_p1 }
  0x1f   : > { %p569_p5 = pnand %p568_p3, %p562_p0 }
  0x91   : > { %v218_v8 = vpop.permute.xlu1 %217 }
  0x92   : > { %v208_v9 = vpop.permute.xlu0 %207 }
  0x95   : > { %v223_v15 = vpop.permute.xlu1 %222 }
  0x96   : > { %v213_v19 = vpop.permute.xlu0 %212 }
  0xdd   : > { %v478_v10 = vpop.f32.mrf.mxu0 }
  0xde   : > { %v291_v11 = vadd.f32 %v478_v10, %v218_v8 }
  0xdf   : > { %v282_v12 = vpop.f32.mrf.mxu0 }
  0xe0   : > { %v454_v13 = vmul.f32 -1.442695, %v291_v11  ;;  %v283_v14 = vadd.f32 %v282_v12, %v208_v9 }
  0xe1   : > { %v479_v16 = vpop.f32.mrf.mxu0 }
  0xe2   : > { %543 = vpow2.f32 %v454_v13  ;;  %v452_v17 = vmul.f32 -1.442695, %v283_v14  ;;  %v294_v18 = vadd.f32 %v479_v16, %v223_v15 }
  0xe3   : > { %v285_v20 = vpop.f32.mrf.mxu0 }
  0xe4   : > { %545 = vpow2.f32 %v452_v17  ;;  %v455_v21 = vmul.f32 -1.442695, %v294_v18  ;;  %v286_v22 = vadd.f32 %v285_v20, %v213_v19 }
  0xe6   : > { %547 = vpow2.f32 %v455_v21  ;;  %v453_v23 = vmul.f32 -1.442695, %v286_v22 }
  0xe8   : > { %549 = vpow2.f32 %v453_v23 }
  0xef   : > { %v544_v24 = vpop.eup %543 }
  0xf0   : > { %v311_v25 = vadd.f32 1.0, %v544_v24 }
  0xf1   : > { %v546_v26 = vpop.eup %545 }
  0xf2   : > { %551 = vrcp.f32 %v311_v25  ;;  %v309_v27 = vadd.f32 1.0, %v546_v26 }
  0xf3   : > { %v548_v28 = vpop.eup %547 }
  0xf4   : > { %553 = vrcp.f32 %v309_v27  ;;  %v312_v29 = vadd.f32 1.0, %v548_v28 }
  0xf5   : > { %v550_v30 = vpop.eup %549 }
  0xf6   : > { %555 = vrcp.f32 %v312_v29  ;;  %v310_v31 = vadd.f32 1.0, %v550_v30 }
  0xf8   : > { %557 = vrcp.f32 %v310_v31 }
  0xff   : > { %v552_v32 = vpop.eup %551 }
 0x100   : > { %v323_v33 = vmul.f32 %v552_v32, %v291_v11 }
 0x101   : > { %v554_v34 = vpop.eup %553 }
 0x102   : > { %v468_v35 = vpack.c.bf16 %v323_v33, %v323_v33  ;;  %v321_v36 = vmul.f32 %v554_v34, %v283_v14 }
 0x103   : > { %v556_v37 = vpop.eup %555 }
 0x104   : > { %344 = vst.msk [vmem:[%s185_s28 + $0x8] sm:$0xf] %vm341_vm1, %v468_v35  ;;  %v466_v38 = vpack.c.bf16 %v321_v36, %v321_v36  ;;  %v324_v39 = vmul.f32 %v556_v37, %v294_v18 }
 0x105   : > { %v558_v40 = vpop.eup %557 }
 0x106   : > { %342 = vst.msk [vmem:[%s185_s28] sm:$0xf] %vm341_vm1, %v466_v38  ;;  %v469_v41 = vpack.c.bf16 %v324_v39, %v324_v39  ;;  %v322_v42 = vmul.f32 %v558_v40, %v286_v22 }
 0x108   : > { %345 = vst.msk [vmem:[%s185_s28 + $0xc] sm:$0xf] %vm341_vm1, %v469_v41  ;;  %v467_v43 = vpack.c.bf16 %v322_v42, %v322_v42 }
 0x10a   : > { %343 = vst.msk [vmem:[%s185_s28 + $0x4] sm:$0xf] %vm341_vm1, %v467_v43 }
 0x10b   : > { %572 = shalt.err (!%p569_p5)
}
 0x10c   : > { %s573_s11 = scalar_lea.hbm %s748_s6, 256  ;;  %s577_s21 = scalar_lea.hbm %s802_s3, 512 }
 0x10d   : > { %p574_p6 = scmp.ne.s32.totalorder %s748_s6, %s573_s11  ;;  %p578_p10 = scmp.lt.s32.totalorder %s748_s6, %s802_s3 }
 0x10e   : > { %p579_p11 = scmp.lt.s32.totalorder %s577_s21, %s573_s11 }
 0x10f   : > { %p575_p7 = pnand %p574_p6, %p701_p4 }
 0x110   : > { %p580_p12 = por %p579_p11, %p578_p10 }
 0x111   : > { %p576_p9 = pneg %p575_p7 }
 0x113   : > { %p581_p13 = pnand %p580_p12, %p576_p9 }
 0x115   : > { %584 = shalt.err (!%p581_p13)
}
 0x116   : > { %s639_s27 = smov 64   ;;  %s640_s28 = smov 4  }
 0x117   : > { %480 = dma.vmem_to_hbm [thread:$0]  (%p701_p4), %s750_s30, 256, %s748_s6, %s754_s15, %s639_s27, %s639_s27, %s640_s28  }
 0x118 PF: > { %p486_p0 = scmp.ge.s32.totalorder %s635_s17, 2  ;;  %s376_s29 = sand.u32 1, %s615_s12  }
 0x119   : > { %s377_s4 = scalar_lea.sflag [#allocation3], %s376_s29 }
 0x11a   : > { %p483_p1 = pnand %p486_p0, %p708_p8 }
 0x11c   : > { %p484_p2 = pneg %p483_p1 }
 0x11e   : > { %610 = dma.done.wait (%p484_p2), %s377_s4, 256  }
 0x11f   : > { %612 = vsyncadd (%p484_p2), %s377_s4, 4294967040  ;;  %s16_s17 = sadd.s32 1, %s635_s17   ;;  %s805_s12 = smov %s619_s13 }
 0x120   : > { %p13_p3 = scmp.ge.s32.totalorder %s16_s17, 4   ;;  %s806_s13 = smov %s623_s14 }
 0x121   : > { %s807_s14 = smov %s714_s25  ;;  %s808_s15 = smov %s631_s16 }
 0x122   : > { %s809_s16 = smov %s811_s20  ;;  %15 = sbr.rel (!%p13_p3) target bundleno = 4 (0x4), region = 67 }
 0x127   :  { %382 = vsyncpa [#allocation3], 1 }
 0x128   :  { %384 = vsyncpa [#allocation3 + $0x1], 1 }

</bundles_post_ra>
